<compile_context>
chip_gen: v5e
topology: v5e:2x2
jax: 0.10.0
libtpu: 0.0.40
codegen_flags: <defaults>
</compile_context>

<pallas_src>
import functools

import jax
import jax.numpy as jnp
from jax.experimental import pallas as pl
from jax.experimental.pallas import tpu as pltpu

_LANE = 128
_SUBLANE = 8


def _round_up(n, m):
    return ((n + m - 1) // m) * m


def _vmem_budget_bytes():
    """Generation-aware cap on the double-buffered per-step VMEM footprint."""
    try:
        cap = int(pltpu.get_tpu_info().vmem_capacity_bytes)
        if cap <= 0:
            cap = 64 << 20
    except Exception:  # interpret mode / older jax -- stay conservative
        cap = 64 << 20
    # v7x: 64 MiB physical -> ~28 MiB budget; v5e/v6e: 128 MiB -> 48 MiB budget.
    return min(48 << 20, cap // 2 - (4 << 20))


def _gate_kernel(x_ref, h_ref, wx_ref, wh_ref, o_ref, *, activation, compute_dtype):
    xb = x_ref[...]
    hb = h_ref[...]
    if xb.dtype != compute_dtype:
        xb = xb.astype(compute_dtype)   # VPU cast, hidden under the MXU
    if hb.dtype != compute_dtype:
        hb = hb.astype(compute_dtype)
    # Two fused-in-one-pass MXU matmuls with f32 accumulation.
    acc = jnp.dot(xb, wx_ref[...], preferred_element_type=jnp.float32)
    acc = acc + jnp.dot(hb, wh_ref[...], preferred_element_type=jnp.float32)
    if activation == "sigmoid":
        acc = jax.nn.sigmoid(acc)       # EUP exp + reciprocal
    elif activation == "tanh":
        acc = jnp.tanh(acc)             # EUP
    elif activation == "relu":
        acc = jnp.maximum(acc, 0.0)     # VPU
    else:
        raise ValueError(f"unknown activation {activation!r}")
    o_ref[...] = acc.astype(o_ref.dtype)


def prepare_gate_params(wx, wh, compute_dtype=jnp.bfloat16):
    """One-time (init-time) weight prep -- NOT part of the per-step hot path.

    Takes PyTorch nn.Linear layout weights (out, in) / (out, out) and returns
    the transposed, MXU-compute-dtype weights (in, out) / (out, out).
    Accumulation stays f32 inside the kernel.
    """
    out_dim, in_dim = wx.shape
    assert wh.shape == (out_dim, out_dim)
    wx_t = jnp.asarray(wx).T.astype(compute_dtype)   # (in_dim, out_dim)
    wh_t = jnp.asarray(wh).T.astype(compute_dtype)   # (out_dim, out_dim)
    return wx_t, wh_t


def _choose_tm(bm, row_budget_rows):
    """MXU-friendly batch tile: multiple of 8, prefers 128/256/512 widths,
    keeps >=2 batch blocks when the batch is big enough (v7x megacore)."""
    if bm <= 128:
        tm = bm
    elif bm <= 512:
        tm = _round_up((bm + 1) // 2, _SUBLANE)   # two blocks, minimal padding
    elif bm <= 2048:
        tm = 256
    else:
        tm = 512
    tm = min(tm, max(_SUBLANE, (row_budget_rows // _SUBLANE) * _SUBLANE))
    return max(_SUBLANE, tm)


def gate_forward(x, h, wx_t, wh_t, activation="sigmoid"):
    """Pallas equivalent of gate.forward: activation(x @ Wx^T + h @ Wh^T).

    `wx_t, wh_t` come from prepare_gate_params (done once at init).
    x: (B, input_dim), h: (B, output_dim). Returns (B, output_dim) in x.dtype.
    """
    if activation not in ("sigmoid", "tanh", "relu"):
        raise ValueError(f"unknown activation {activation!r}")

    b, in_dim = x.shape
    in_dim_w, out_dim = wx_t.shape
    assert in_dim == in_dim_w
    assert h.shape == (b, out_dim)
    assert wh_t.shape == (out_dim, out_dim)

    compute_dtype = wx_t.dtype
    out_dtype = x.dtype
    w_isz = jnp.dtype(compute_dtype).itemsize
    x_isz = jnp.dtype(x.dtype).itemsize
    h_isz = jnp.dtype(h.dtype).itemsize
    o_isz = jnp.dtype(out_dtype).itemsize

    budget = _vmem_budget_bytes()
    w_bytes = (in_dim * out_dim + out_dim * out_dim) * w_isz
    # double-buffered activation + output bytes per batch row per grid step
    row_bytes = 2 * (in_dim * x_isz + out_dim * h_isz + out_dim * o_isz)
    bm = _round_up(b, _SUBLANE)

    kernel = functools.partial(
        _gate_kernel, activation=activation, compute_dtype=compute_dtype)

    flops = 2 * b * (in_dim + out_dim) * out_dim
    transcendentals = b * out_dim if activation in ("sigmoid", "tanh") else 0
    bytes_accessed = (b * in_dim * x_isz + b * out_dim * h_isz
                      + w_bytes + b * out_dim * o_isz)
    cost = pl.CostEstimate(flops=flops, transcendentals=transcendentals,
                           bytes_accessed=bytes_accessed)

    # Resident-weight path is possible when both weights (conservatively double
    # buffered) plus a reasonable batch tile fit the budget.
    resident = 2 * w_bytes + row_bytes * min(bm, 256) <= budget
    if not resident and out_dim % _LANE != 0:
        # Streaming needs lane-dense (128-multiple) weight/output column tiles;
        # a huge non-128-multiple out_dim is an unrealistic corner for a gate.
        # TODO(synk): K-split grid axis + column padding for this corner.
        resident = True

    if resident:
        row_budget_rows = (budget - 2 * w_bytes) // max(row_bytes, 1)
        tm = _choose_tm(bm, row_budget_rows)
        grid = (pl.cdiv(b, tm),)
        in_specs = [
            pl.BlockSpec((tm, in_dim), lambda i: (i, 0)),
            pl.BlockSpec((tm, out_dim), lambda i: (i, 0)),
            pl.BlockSpec((in_dim, out_dim), lambda i: (0, 0)),   # VMEM-resident
            pl.BlockSpec((out_dim, out_dim), lambda i: (0, 0)),  # VMEM-resident
        ]
        out_specs = pl.BlockSpec((tm, out_dim), lambda i: (i, 0))
        dim_sem = ("parallel",)
        step_bytes = 2 * w_bytes + row_bytes * tm
    else:
        # Stream weights in lane-dense column tiles.
        tn_cands = [c for c in (512, 256, 128) if out_dim % c == 0]
        tn = tn_cands[0]
        tm = min(256, bm)
        tm = max(_SUBLANE, (tm // _SUBLANE) * _SUBLANE)

        def stream_step_bytes(tm_, tn_):
            w_tile = 2 * (in_dim + out_dim) * tn_ * w_isz
            act_tile = 2 * tm_ * (in_dim * x_isz + out_dim * h_isz)
            out_tile = 2 * tm_ * tn_ * o_isz
            return w_tile + act_tile + out_tile

        while stream_step_bytes(tm, tn) > budget and tn != tn_cands[-1]:
            tn = tn_cands[tn_cands.index(tn) + 1]
        while stream_step_bytes(tm, tn) > budget and tm > 128:
            tm = max(128, (tm // 2 // _SUBLANE) * _SUBLANE)
        # TODO(synk): for very large contraction dims add a K grid axis
        # ("arbitrary", last) with a VMEM f32 accumulator instead of letting
        # the full-K tiles grow; keeps TM >= 128 without over-running VMEM.

        ni = pl.cdiv(b, tm)
        nj = out_dim // tn
        act_total = b * (in_dim * x_isz + out_dim * h_isz)
        if w_bytes >= act_total:
            # j outer / i inner: weight column tile resident across the inner
            # batch loop -> weights are read from HBM exactly once.
            grid = (nj, ni)
            in_specs = [
                pl.BlockSpec((tm, in_dim), lambda j, i: (i, 0)),
                pl.BlockSpec((tm, out_dim), lambda j, i: (i, 0)),
                pl.BlockSpec((in_dim, tn), lambda j, i: (0, j)),
                pl.BlockSpec((out_dim, tn), lambda j, i: (0, j)),
            ]
            out_specs = pl.BlockSpec((tm, tn), lambda j, i: (i, j))
        else:
            # i outer / j inner: activations read once, weights stream.
            grid = (ni, nj)
            in_specs = [
                pl.BlockSpec((tm, in_dim), lambda i, j: (i, 0)),
                pl.BlockSpec((tm, out_dim), lambda i, j: (i, 0)),
                pl.BlockSpec((in_dim, tn), lambda i, j: (0, j)),
                pl.BlockSpec((out_dim, tn), lambda i, j: (0, j)),
            ]
            out_specs = pl.BlockSpec((tm, tn), lambda i, j: (i, j))
        dim_sem = ("parallel", "parallel")
        step_bytes = stream_step_bytes(tm, tn)

    # Only ever RAISE the scoped-VMEM limit (defaults: 16 MiB v5e, 32 MiB
    # v6e/v7x); never set it below 32 MiB.
    vmem_need = int(step_bytes * 1.25)
    vmem_limit = max(vmem_need, 32 << 20) if vmem_need > (16 << 20) else None

    return pl.pallas_call(
        kernel,
        out_shape=jax.ShapeDtypeStruct((b, out_dim), out_dtype),
        grid=grid,
        in_specs=in_specs,
        out_specs=out_specs,
        compiler_params=pltpu.CompilerParams(
            dimension_semantics=dim_sem,
            vmem_limit_bytes=vmem_limit,
        ),
        cost_estimate=cost,
    )(x, h, wx_t, wh_t)


def xavier_uniform(key, shape, dtype=jnp.float32):
    """Matches torch.nn.init.xavier_uniform_ for a 2D weight (fan_out, fan_in)."""
    fan_out, fan_in = shape
    limit = jnp.sqrt(6.0 / (fan_in + fan_out))
    return jax.random.uniform(key, shape, dtype, minval=-limit, maxval=limit)


def _bf16_reference(x, h, wx, wh, activation):
    """JAX reference with bf16 operands / f32 accumulation (matches kernel math)."""
    xb, hb = x.astype(jnp.bfloat16), h.astype(jnp.bfloat16)
    wxb, whb = wx.T.astype(jnp.bfloat16), wh.T.astype(jnp.bfloat16)
    acc = (jnp.dot(xb, wxb, preferred_element_type=jnp.float32)
           + jnp.dot(hb, whb, preferred_element_type=jnp.float32))
    if activation == "sigmoid":
        return jax.nn.sigmoid(acc)
    if activation == "tanh":
        return jnp.tanh(acc)
    return jnp.maximum(acc, 0.0)


def _f32_reference(x, h, wx, wh, activation):
    acc = x @ wx.T + h @ wh.T
    if activation == "sigmoid":
        return jax.nn.sigmoid(acc)
    if activation == "tanh":
        return jnp.tanh(acc)
    return jnp.maximum(acc, 0.0)


if __name__ == "__main__":
    key = jax.random.PRNGKey(0)

    # --- test 1: the module's canonical small shape, sigmoid ---
    input_dim, output_dim, batch = 32, 32, 8
    k_wx, k_wh, k_x, k_h, key = jax.random.split(key, 5)
    wx = xavier_uniform(k_wx, (output_dim, input_dim))   # l_x.weight (out, in)
    wh = xavier_uniform(k_wh, (output_dim, output_dim))  # l_h.weight (out, out)
    x = jax.random.normal(k_x, (batch, input_dim), dtype=jnp.float32)
    h = jax.random.normal(k_h, (batch, output_dim), dtype=jnp.float32)

    wx_t, wh_t = prepare_gate_params(wx, wh)             # once, at init
    out = jax.block_until_ready(gate_forward(x, h, wx_t, wh_t, "sigmoid"))
    assert out.shape == (batch, output_dim)
    assert jnp.allclose(out, _f32_reference(x, h, wx, wh, "sigmoid"),
                        atol=2e-2, rtol=2e-2)
    assert jnp.allclose(out, _bf16_reference(x, h, wx, wh, "sigmoid"),
                        atol=2e-4, rtol=2e-4)

    # --- test 2: batch not a multiple of 8 (exercises masked partial block), tanh ---
    input_dim2, output_dim2, batch2 = 64, 64, 5
    k_wx2, k_wh2, k_x2, k_h2, key = jax.random.split(key, 5)
    wx2 = xavier_uniform(k_wx2, (output_dim2, input_dim2))
    wh2 = xavier_uniform(k_wh2, (output_dim2, output_dim2))
    x2 = jax.random.normal(k_x2, (batch2, input_dim2), dtype=jnp.float32)
    h2 = jax.random.normal(k_h2, (batch2, output_dim2), dtype=jnp.float32)

    wx2_t, wh2_t = prepare_gate_params(wx2, wh2)
    out2 = jax.block_until_ready(gate_forward(x2, h2, wx2_t, wh2_t, "tanh"))
    assert out2.shape == (batch2, output_dim2)
    assert jnp.allclose(out2, _f32_reference(x2, h2, wx2, wh2, "tanh"),
                        atol=3e-2, rtol=3e-2)
    assert jnp.allclose(out2, _bf16_reference(x2, h2, wx2, wh2, "tanh"),
                        atol=2e-4, rtol=2e-4)

    print("KERNEL_OK")
</pallas_src>

<mosaic_0001>
module attributes {stable_mosaic.version = 11 : i64} {
  func.func @_gate_kernel(%arg0: i32, %arg1: memref<8x32xf32, #tpu.memory_space<vmem>>, %arg2: memref<8x32xf32, #tpu.memory_space<vmem>>, %arg3: memref<32x32xbf16, #tpu.memory_space<vmem>>, %arg4: memref<32x32xbf16, #tpu.memory_space<vmem>>, %arg5: memref<8x32xf32, #tpu.memory_space<vmem>>) attributes {dimension_semantics = [#tpu.dimension_semantics<parallel>], iteration_bounds = array<i64: 1>, scalar_prefetch = 0 : i64, scratch_operands = 0 : i64, tpu.core_type = #tpu.core_type<tc>, window_params = [{transform_indices = @transform_0, window_bounds = array<i64: 8, 32>}, {transform_indices = @transform_1, window_bounds = array<i64: 8, 32>}, {pipeline_mode = #tpu.pipeline_mode<synchronous>, transform_indices = @transform_2, window_bounds = array<i64: 32, 32>}, {pipeline_mode = #tpu.pipeline_mode<synchronous>, transform_indices = @transform_3, window_bounds = array<i64: 32, 32>}, {transform_indices = @transform_4, window_bounds = array<i64: 8, 32>}]} {
    %c0 = arith.constant 0 : index
    %c0_0 = arith.constant 0 : index
    %0 = vector.load %arg1[%c0, %c0_0] : memref<8x32xf32, #tpu.memory_space<vmem>>, vector<8x32xf32>
    %c0_1 = arith.constant 0 : index
    %c0_2 = arith.constant 0 : index
    %1 = vector.load %arg2[%c0_1, %c0_2] : memref<8x32xf32, #tpu.memory_space<vmem>>, vector<8x32xf32>
    %2 = arith.truncf %0 : vector<8x32xf32> to vector<8x32xbf16>
    %3 = arith.truncf %1 : vector<8x32xf32> to vector<8x32xbf16>
    %c0_3 = arith.constant 0 : index
    %c0_4 = arith.constant 0 : index
    %4 = vector.load %arg3[%c0_3, %c0_4] : memref<32x32xbf16, #tpu.memory_space<vmem>>, vector<32x32xbf16>
    %cst = arith.constant dense<0.000000e+00> : vector<8x32xf32>
    %5 = tpu.matmul %2, %4, %cst {dimension_numbers = #tpu.dot_dimension_numbers<[1], [0], [0], [1], [0, 0, 1, 1], [], []>} : vector<8x32xbf16>, vector<32x32xbf16>, vector<8x32xf32> -> vector<8x32xf32>
    %c0_5 = arith.constant 0 : index
    %c0_6 = arith.constant 0 : index
    %6 = vector.load %arg4[%c0_5, %c0_6] : memref<32x32xbf16, #tpu.memory_space<vmem>>, vector<32x32xbf16>
    %cst_7 = arith.constant dense<0.000000e+00> : vector<8x32xf32>
    %7 = tpu.matmul %3, %6, %cst_7 {dimension_numbers = #tpu.dot_dimension_numbers<[1], [0], [0], [1], [0, 0, 1, 1], [], []>} : vector<8x32xbf16>, vector<32x32xbf16>, vector<8x32xf32> -> vector<8x32xf32>
    %8 = arith.addf %5, %7 : vector<8x32xf32>
    %9 = arith.negf %8 : vector<8x32xf32>
    %10 = math.exp %9 : vector<8x32xf32>
    %cst_8 = arith.constant 1.000000e+00 : f32
    %11 = vector.broadcast %cst_8 : f32 to vector<8x32xf32>
    %12 = arith.addf %11, %10 : vector<8x32xf32>
    %13 = arith.divf %11, %12 : vector<8x32xf32>
    %c0_9 = arith.constant 0 : index
    %c0_10 = arith.constant 0 : index
    %14 = vector.load %arg5[%c0_9, %c0_10] : memref<8x32xf32, #tpu.memory_space<vmem>>, vector<8x32xf32>
    tpu.vector_store %arg5[%c0_9, %c0_10], %13 {strides = array<i32>} : memref<8x32xf32, #tpu.memory_space<vmem>>, vector<8x32xf32>,
    return
  }
  func.func @transform_0(%arg0: i32) -> (i32, i32) {
    %c0_i32 = arith.constant 0 : i32
    %c0_i32_0 = arith.constant 0 : i32
    return %arg0, %c0_i32 : i32, i32
  }
  func.func @transform_1(%arg0: i32) -> (i32, i32) {
    %c0_i32 = arith.constant 0 : i32
    %c0_i32_0 = arith.constant 0 : i32
    return %arg0, %c0_i32 : i32, i32
  }
  func.func @transform_2(%arg0: i32) -> (i32, i32) {
    %c0_i32 = arith.constant 0 : i32
    %c0_i32_0 = arith.constant 0 : i32
    %c0_i32_1 = arith.constant 0 : i32
    return %c0_i32, %c0_i32_0 : i32, i32
  }
  func.func @transform_3(%arg0: i32) -> (i32, i32) {
    %c0_i32 = arith.constant 0 : i32
    %c0_i32_0 = arith.constant 0 : i32
    %c0_i32_1 = arith.constant 0 : i32
    return %c0_i32, %c0_i32_0 : i32, i32
  }
  func.func @transform_4(%arg0: i32) -> (i32, i32) {
    %c0_i32 = arith.constant 0 : i32
    %c0_i32_0 = arith.constant 0 : i32
    return %arg0, %c0_i32 : i32, i32
  }
}

</mosaic_0001>

<bundles_post_ra>
// kernel: tpu_custom_call.1
= control target key start
LH: loop header
LB: loop body
LE: loop exit
PB: predicated region body
PF: predicated region fallthrough
CT: control target
= control target key end

     0   :  { %9 = vsyncpa [#allocation3], 0  ;;  %s398_s0 = inlined_call_operand.hbm [shape: f32[8,32], index: 0, kind: input, shape index: {}]   ;;  %s399_s1 = inlined_call_operand.hbm [shape: f32[8,32], index: 1, kind: input, shape index: {}]   ;;  %s400_s2 = inlined_call_operand.hbm [shape: bf16[32,32], index: 2, kind: input, shape index: {}]   ;;  %s401_s3 = inlined_call_operand.hbm [shape: bf16[32,32], index: 3, kind: input, shape index: {}]   ;;  %s402_s4 = inlined_call_operand.hbm [shape: f32[8,32], index: 4, kind: output, shape index: {}]  }
   0x1   :  { %10 = vsyncpa [#allocation6], 0 }
   0x2   :  { %11 = vsyncpa [#allocation9], 0  ;;  %s29_s17 = sshll.u32 %s399_s1, 4  ;;  %s30_s17 = int_to_ptr.hbm [resolvable:$true] %s29_s17 }
   0x3   :  { %12 = vsyncpa [#allocation4], 0  ;;  %s348_s18 = smov [#allocation5]   ;;  %s18_s22 = sshll.u32 %s398_s0, 4  ;;  %s19_s22 = int_to_ptr.hbm [resolvable:$true] %s18_s22 }
   0x4   :  { %s31_s19 = sshll.u32 %s348_s18, 4  ;;  %s349_s23 = smov [#allocation2]   ;;  %s32_s19 = int_to_ptr.vmem [resolvable:$true] %s31_s19 }
   0x5   :  { %34 = dma.hbm_to_vmem [thread:$0]  %s30_s17, 128, %s32_s19, [#allocation6]  }
   0x6   :  { %s20_s24 = sshll.u32 %s349_s23, 4  ;;  %s39_s27 = sshll.u32 %s400_s2, 4  ;;  %s21_s24 = int_to_ptr.vmem [resolvable:$true] %s20_s24  ;;  %s40_s27 = int_to_ptr.hbm [resolvable:$true] %s39_s27 }
   0x7   :  { %23 = dma.hbm_to_vmem [thread:$0]  %s19_s22, 128, %s21_s24, [#allocation3]  }
   0x8   :  { %s350_s1 = smov [#allocation7]   ;;  %s52_s5 = sshll.u32 %s401_s3, 4  ;;  %s53_s5 = int_to_ptr.hbm [resolvable:$true] %s52_s5 }
   0x9   :  { %s41_s28 = sshll.u32 %s350_s1, 4  ;;  %s351_s6 = smov 64   ;;  %s42_s28 = int_to_ptr.vmem [resolvable:$true] %s41_s28 }
   0xa   :  { %s352_s0 = smov 4   ;;  %s353_s7 = smov [#allocation8]  }
   0xb   :  { %47 = dma.hbm_to_vmem [thread:$0]  %s40_s27, 256, %s42_s28, [#allocation6], %s351_s6, %s351_s6, %s352_s0  }
   0xc   :  { %s54_s8 = sshll.u32 %s353_s7, 4  ;;  %s55_s8 = int_to_ptr.vmem [resolvable:$true] %s54_s8 }
   0xd   :  { %60 = dma.hbm_to_vmem [thread:$0]  %s53_s5, 256, %s55_s8, [#allocation9], %s351_s6, %s351_s6, %s352_s0  }
   0xe   :  { %340 = dma.done.wait [#allocation3], 128  }
   0xf   :  { %341 = vsyncadd [#allocation3], 4294967168 }
  0x10   :  { %342 = dma.done.wait [#allocation6], 384  }
  0x11   :  { %343 = vsyncadd [#allocation6], 4294966912 }
  0x12   :  { %344 = dma.done.wait [#allocation9], 256  }
  0x13   :  { %345 = vsyncadd [#allocation9], 4294967040  ;;  %v208_v0 = vld [vmem:[#allocation8 + $0x8] sm:$0xff]  ;;  %v206_v1 = vld [vmem:[#allocation7 + $0x8] sm:$0xff]  ;;  %vm102_vm0 = vcmask 261120   ;;  %s354_s2 = smov [#allocation10]  }
  0x14   :  { %v207_v2 = vld [vmem:[#allocation8] sm:$0xff]  ;;  %112 = vmatpush.bf16.msra.mxu0 %v208_v0  ;;  %140 = vmatpush.bf16.msra.mxu1 %v206_v1  ;;  %v205_v3 = vld [vmem:[#allocation7] sm:$0xff]  ;;  %v79_v4 = vld [vmem:[#allocation5] sm:$0xff]  ;;  %s172_s3 = sshll.u32 %s354_s2, 4  ;;  %s174_s11 = sshll.u32 %s402_s4, 4  ;;  %s173_s3 = int_to_ptr.vmem [resolvable:$true] %s172_s3  ;;  %s175_s11 = int_to_ptr.hbm [resolvable:$true] %s174_s11 }
  0x15   :  { %v78_v5 = vld [vmem:[#allocation2] sm:$0xff]  ;;  %v81_v6 = vpack.c.bf16 %v79_v4, %v79_v4 }
  0x16   :  { %v80_v7 = vpack.c.bf16 %v78_v5, %v78_v5 }
  0x18   :  { %113 = vmatpush.bf16.msra.mxu0 %v207_v2  ;;  %141 = vmatpush.bf16.msra.mxu1 %v205_v3 }
  0x1b   :  { %194 = vmatmul.msk.bf16.vlgmr.msra.gmra.mxu0 %vm102_vm0, %v81_v6  ;;  %203 = vmatmul.msk.bf16.vlgmr.msra.gmra.mxu1 %vm102_vm0, %v80_v7 }
  0x98   :  { %v115_v8 = vpop.f32.mrf.mxu0  ;;  %v143_v9 = vpop.f32.mrf.mxu1 }
  0x99   :  { %v144_v10 = vadd.f32 %v143_v9, %v115_v8 }
  0x9b   :  { %v204_v11 = vmul.f32 -1.442695, %v144_v10 }
  0x9d   :  { %216 = vpow2.f32 %v204_v11 }
  0xa0   :  { %v117_v12 = vpop.f32.mrf.mxu0  ;;  %v145_v13 = vpop.f32.mrf.mxu1 }
  0xa3   :  { %v217_v14 = vpop.eup %216 }
  0xa4   :  { %v150_v15 = vadd.f32 1.0, %v217_v14 }
  0xa6   :  { %218 = vrcp.f32 %v150_v15  ;;  %v162_v19 = vand.u32 2147483648, %v150_v15  ;;  %v160_v21 = vand.u32 2147483647, %v150_v15  ;;  %vm156_vm2 = vweird.f32 %v150_v15 }
  0xa8   :  { %v163_v23 = vor.u32 1.1754944e-38, %v162_v19  ;;  %vm161_vm4 = vcmp.eq.f32.partialorder %v160_v21, 8.507059e+37 }
  0xac   :  { %v219_v16 = vpop.eup %218 }
  0xad   :  { %v152_v17 = vmul.f32 %v219_v16, %v150_v15  ;;  %vm157_vm1 = vweird.f32 %v219_v16 }
  0xae   :  { %vm158_vm3 = vmor %vm156_vm2, %vm157_vm1 }
  0xaf   :  { %v153_v18 = vsub.f32 1.0, %v152_v17 }
  0xb1   :  { %v154_v20 = vmul.f32 %v219_v16, %v153_v18 }
  0xb3   :  { %v155_v22 = vadd.f32 %v219_v16, %v154_v20 }
  0xb5   :  { %v159_v24 = vsel %vm158_vm3, %v219_v16, %v155_v22 }
  0xb6   :  { %v164_v25 = vsel %vm161_vm4, %v163_v23, %v159_v24 }
  0xb7   :  { %166 = vst.msk [vmem:[#allocation10] sm:$0xff] %vm102_vm0, %v164_v25 }
  0xb8   :  { %177 = dma.vmem_to_hbm [thread:$0]  %s173_s3, 128, %s175_s11, [#allocation4]  }
  0xb9   :  { %346 = dma.done.wait [#allocation4], 128  }
  0xba   :  { %347 = vsyncadd [#allocation4], 4294967168 }
  0xbb   :  { %182 = vsyncpa [#allocation3], 1 }
  0xbc   :  { %183 = vsyncpa [#allocation6], 1 }
  0xbd   :  { %184 = vsyncpa [#allocation9], 1 }
  0xbe   :  { %185 = vsyncpa [#allocation4], 1 }

</bundles_post_ra>
